<compile_context>
chip_gen: v6e
topology: v6e:2x2x1
jax: 0.10.0
libtpu: 0.0.40
codegen_flags: <defaults>
</compile_context>

<pallas_src>
import jax
import jax.numpy as jnp
from jax.experimental import pallas as pl
from jax.experimental.pallas import tpu as pltpu


def _band_weights(w_hwio, W):
    """Fold the 3 W-taps (and the W-boundary zero padding) into a band matrix.

    w_hwio: (3, 3, Cin, Cout) float32, BN scale already folded in.
    Returns (3*W*Cin, W*Cout) with
        B[dy*W*Cin + wi*Cin + ci, wo*Cout + co] = w[dy, dx, ci, co]
    where wi = wo + dx - 1 and only valid 0 <= wi < W entries are kept
    (out-of-range taps are dropped == zero padding along W).
    """
    KH, KW, Cin, Cout = w_hwio.shape
    wi = jnp.arange(W)[:, None, None]           # a
    wo = jnp.arange(W)[None, :, None]           # b
    dx = jnp.arange(KW)[None, None, :]          # x
    mask = (wi == wo + dx - 1).astype(w_hwio.dtype)          # (W, W, KW)
    band = jnp.einsum('abx,dxcp->dacbp', mask, w_hwio)       # (KH, W, Cin, W, Cout)
    return band.reshape(KH * W * Cin, W * Cout)


def basic_block_kernel(x_ref, b1_ref, b2_ref, sh1_ref, sh2_ref, out_ref, xp):
    H = out_ref.shape[1]
    WC = out_ref.shape[2]

    x = x_ref[0].astype(jnp.float32)            # (H, W*C), lane-dense

    # Zero only the two halo rows, every step (tiny; keeps the "parallel"
    # grid megacore-safe since no state is carried across grid steps).
    zrow = jnp.zeros((1, WC), jnp.float32)
    xp[0:1, :] = zrow
    xp[H + 1:H + 2, :] = zrow

    def conv3x3(img, b_ref):
        # img: (H, W*C) f32. One banded im2col matmul (bf16 operands, f32 acc).
        xp[1:H + 1, :] = img                     # interior rows
        up = xp[0:H, :]                          # rows h-1 (row 0 is zero halo)
        dn = xp[2:H + 2, :]                      # rows h+1 (row H+1 is zero halo)
        xcat = jnp.concatenate([up, img, dn], axis=-1)       # (H, 3*W*C)
        return jnp.dot(xcat.astype(jnp.bfloat16), b_ref[...],
                       preferred_element_type=jnp.float32)

    # conv1 -> bn1 (scale folded into B1, shift added here) -> relu
    o1 = jnp.maximum(conv3x3(x, b1_ref) + sh1_ref[...], 0.0)

    # conv2 -> bn2 (folded)
    o2 = conv3x3(o1, b2_ref) + sh2_ref[...]

    # residual add (downsample=None => identity) + relu
    out_ref[0] = jnp.maximum(o2 + x, 0.0).astype(out_ref.dtype)


def basic_block_nhwc(x_nhwc, w1_hwio, w2_hwio, scale1, shift1, scale2, shift2):
    """x_nhwc: (N,H,W,C); w*: (3,3,C,P) HWIO; scale/shift: (P,) eval-mode BN."""
    N, H, W, C = x_nhwc.shape
    P = w1_hwio.shape[-1]
    assert C == P, "downsample=None / stride=1 requires inplanes == planes"
    WC, WP = W * C, W * P

    # Fold BN scale into the conv weights; build banded weights once (bf16).
    w1s = w1_hwio.astype(jnp.float32) * scale1.astype(jnp.float32)[None, None, None, :]
    w2s = w2_hwio.astype(jnp.float32) * scale2.astype(jnp.float32)[None, None, None, :]
    b1 = _band_weights(w1s, W).astype(jnp.bfloat16)          # (3*W*C, W*P)
    b2 = _band_weights(w2s, W).astype(jnp.bfloat16)          # (3*W*P, W*P)
    sh1 = jnp.tile(shift1.astype(jnp.float32), W).reshape(1, WP)
    sh2 = jnp.tile(shift2.astype(jnp.float32), W).reshape(1, WP)

    # Lane-dense activation layout: (N, H, W*C).
    x2 = x_nhwc.reshape(N, H, WC)

    out2 = pl.pallas_call(
        basic_block_kernel,
        out_shape=jax.ShapeDtypeStruct((N, H, WP), x_nhwc.dtype),
        grid_spec=pltpu.PrefetchScalarGridSpec(
            num_scalar_prefetch=0,
            grid=(N,),
            in_specs=[
                pl.BlockSpec((1, H, WC), lambda n: (n, 0, 0)),
                pl.BlockSpec((3 * WC, WP), lambda n: (0, 0)),
                pl.BlockSpec((3 * WP, WP), lambda n: (0, 0)),
                pl.BlockSpec((1, WP), lambda n: (0, 0)),
                pl.BlockSpec((1, WP), lambda n: (0, 0)),
            ],
            out_specs=pl.BlockSpec((1, H, WP), lambda n: (n, 0, 0)),
            scratch_shapes=[pltpu.VMEM((H + 2, WC), jnp.float32)],
        ),
        compiler_params=pltpu.CompilerParams(
            dimension_semantics=("parallel",)),
    )(x2, b1, b2, sh1, sh2)

    return out2.reshape(N, H, W, P)


def basic_block_nchw(x_nchw, w1_oihw, w2_oihw,
                     g1, b1, rm1, rv1, g2, b2, rm2, rv2, eps=1e-5):
    """PyTorch-convention entry point: NCHW input, OIHW conv weights."""
    x_nhwc = jnp.transpose(x_nchw, (0, 2, 3, 1))
    w1 = jnp.transpose(w1_oihw, (2, 3, 1, 0))
    w2 = jnp.transpose(w2_oihw, (2, 3, 1, 0))
    # Eval-mode BN -> per-channel scale/shift.
    sc1 = g1 / jnp.sqrt(rv1 + eps)
    sh1 = b1 - rm1 * sc1
    sc2 = g2 / jnp.sqrt(rv2 + eps)
    sh2 = b2 - rm2 * sc2
    y_nhwc = basic_block_nhwc(x_nhwc, w1, w2, sc1, sh1, sc2, sh2)
    return jnp.transpose(y_nhwc, (0, 3, 1, 2))


def _reference_nchw(x_nchw, w1_oihw, w2_oihw,
                    g1, b1, rm1, rv1, g2, b2, rm2, rv2, eps=1e-5):
    """Pure-JAX reference (lax.conv, f32) for the correctness check."""
    x = jnp.transpose(x_nchw, (0, 2, 3, 1))
    w1 = jnp.transpose(w1_oihw, (2, 3, 1, 0))
    w2 = jnp.transpose(w2_oihw, (2, 3, 1, 0))
    dn = ('NHWC', 'HWIO', 'NHWC')
    o = jax.lax.conv_general_dilated(x, w1, (1, 1), 'SAME',
                                     dimension_numbers=dn)
    o = (o - rm1) / jnp.sqrt(rv1 + eps) * g1 + b1
    o = jnp.maximum(o, 0.0)
    o = jax.lax.conv_general_dilated(o, w2, (1, 1), 'SAME',
                                     dimension_numbers=dn)
    o = (o - rm2) / jnp.sqrt(rv2 + eps) * g2 + b2
    o = jnp.maximum(o + x, 0.0)
    return jnp.transpose(o, (0, 3, 1, 2))


if __name__ == "__main__":
    # Small shapes consistent with the module: batch=2, channels=8, 16x16.
    # (W * C = 128 makes the packed lane dim fully dense.)
    N, C, H, W = 2, 8, 16, 16
    P = C  # planes == inplanes (downsample=None, stride=1)

    key = jax.random.PRNGKey(0)
    k = jax.random.split(key, 8)
    x = jax.random.normal(k[0], (N, C, H, W), jnp.float32)

    # Conv weights in PyTorch OIHW layout.
    w1 = jax.random.normal(k[1], (P, C, 3, 3), jnp.float32) * 0.1
    w2 = jax.random.normal(k[2], (P, P, 3, 3), jnp.float32) * 0.1

    # BatchNorm parameters / running stats (eval-mode).
    g1 = 1.0 + 0.1 * jax.random.normal(k[3], (P,), jnp.float32)
    b1 = 0.05 * jax.random.normal(k[4], (P,), jnp.float32)
    rm1 = 0.02 * jnp.arange(P, dtype=jnp.float32)
    rv1 = 1.0 + 0.05 * jnp.arange(P, dtype=jnp.float32)
    g2 = 1.0 + 0.1 * jax.random.normal(k[5], (P,), jnp.float32)
    b2 = 0.05 * jax.random.normal(k[6], (P,), jnp.float32)
    rm2 = -0.01 * jnp.arange(P, dtype=jnp.float32)
    rv2 = 1.0 + 0.03 * jnp.arange(P, dtype=jnp.float32)

    y = basic_block_nchw(x, w1, w2, g1, b1, rm1, rv1, g2, b2, rm2, rv2)
    y = jax.block_until_ready(y)

    y_ref = _reference_nchw(x, w1, w2, g1, b1, rm1, rv1, g2, b2, rm2, rv2)
    y_ref = jax.block_until_ready(y_ref)

    assert y.shape == (N, P, H, W)
    # Tolerance accounts for bf16 MXU operands (f32 accumulation) in the kernel
    # vs. the all-f32 lax.conv reference; observed error is well below this.
    assert jnp.allclose(y, y_ref, atol=1e-1, rtol=1e-1), (
        float(jnp.max(jnp.abs(y - y_ref))))
    print("KERNEL_OK")
</pallas_src>

<mosaic_0001>
module attributes {stable_mosaic.version = 11 : i64} {
  func.func @basic_block_kernel(%arg0: i32, %arg1: memref<1x16x128xf32, #tpu.memory_space<vmem>>, %arg2: memref<384x128xbf16, #tpu.memory_space<vmem>>, %arg3: memref<384x128xbf16, #tpu.memory_space<vmem>>, %arg4: memref<1x128xf32, #tpu.memory_space<vmem>>, %arg5: memref<1x128xf32, #tpu.memory_space<vmem>>, %arg6: memref<1x16x128xf32, #tpu.memory_space<vmem>>, %arg7: memref<18x128xf32, #tpu.memory_space<vmem>>) attributes {dimension_semantics = [#tpu.dimension_semantics<parallel>], iteration_bounds = array<i64: 2>, scalar_prefetch = 0 : i64, scratch_operands = 1 : i64, tpu.core_type = #tpu.core_type<tc>, window_params = [{transform_indices = @transform_0, window_bounds = array<i64: 1, 16, 128>}, {pipeline_mode = #tpu.pipeline_mode<synchronous>, transform_indices = @transform_1, window_bounds = array<i64: 384, 128>}, {pipeline_mode = #tpu.pipeline_mode<synchronous>, transform_indices = @transform_2, window_bounds = array<i64: 384, 128>}, {pipeline_mode = #tpu.pipeline_mode<synchronous>, transform_indices = @transform_3, window_bounds = array<i64: 1, 128>}, {pipeline_mode = #tpu.pipeline_mode<synchronous>, transform_indices = @transform_4, window_bounds = array<i64: 1, 128>}, {transform_indices = @transform_5, window_bounds = array<i64: 1, 16, 128>}]} {
    %c0 = arith.constant 0 : index
    %c0_0 = arith.constant 0 : index
    %c0_1 = arith.constant 0 : index
    %0 = vector.load %arg1[%c0, %c0_0, %c0_1] : memref<1x16x128xf32, #tpu.memory_space<vmem>>, vector<1x16x128xf32>
    %1 = vector.shape_cast %0 : vector<1x16x128xf32> to vector<16x128xf32>
    %cst = arith.constant 0.000000e+00 : f32
    %2 = vector.broadcast %cst : f32 to vector<1x128xf32>
    %c0_2 = arith.constant 0 : index
    %c0_3 = arith.constant 0 : index
    %3 = vector.load %arg7[%c0_2, %c0_3] : memref<18x128xf32, #tpu.memory_space<vmem>>, vector<1x128xf32>
    tpu.vector_store %arg7[%c0_2, %c0_3], %2 {strides = array<i32>} : memref<18x128xf32, #tpu.memory_space<vmem>>, vector<1x128xf32>,
    %c17 = arith.constant 17 : index
    %c0_4 = arith.constant 0 : index
    %4 = vector.load %arg7[%c17, %c0_4] : memref<18x128xf32, #tpu.memory_space<vmem>>, vector<1x128xf32>
    tpu.vector_store %arg7[%c17, %c0_4], %2 {strides = array<i32>} : memref<18x128xf32, #tpu.memory_space<vmem>>, vector<1x128xf32>,
    %c1 = arith.constant 1 : index
    %c0_5 = arith.constant 0 : index
    %5 = vector.load %arg7[%c1, %c0_5] : memref<18x128xf32, #tpu.memory_space<vmem>>, vector<16x128xf32>
    tpu.vector_store %arg7[%c1, %c0_5], %1 {strides = array<i32>} : memref<18x128xf32, #tpu.memory_space<vmem>>, vector<16x128xf32>,
    %c0_6 = arith.constant 0 : index
    %c0_7 = arith.constant 0 : index
    %6 = vector.load %arg7[%c0_6, %c0_7] : memref<18x128xf32, #tpu.memory_space<vmem>>, vector<16x128xf32>
    %c2 = arith.constant 2 : index
    %c0_8 = arith.constant 0 : index
    %7 = vector.load %arg7[%c2, %c0_8] : memref<18x128xf32, #tpu.memory_space<vmem>>, vector<16x128xf32>
    %8 = tpu.concatenate %6, %1, %7 in 1 : vector<16x128xf32>, vector<16x128xf32>, vector<16x128xf32> -> vector<16x384xf32>
    %9 = arith.truncf %8 : vector<16x384xf32> to vector<16x384xbf16>
    %c0_9 = arith.constant 0 : index
    %c0_10 = arith.constant 0 : index
    %10 = vector.load %arg2[%c0_9, %c0_10] : memref<384x128xbf16, #tpu.memory_space<vmem>>, vector<384x128xbf16>
    %cst_11 = arith.constant dense<0.000000e+00> : vector<16x128xf32>
    %11 = tpu.matmul %9, %10, %cst_11 {dimension_numbers = #tpu.dot_dimension_numbers<[1], [0], [0], [1], [0, 0, 1, 1], [], []>} : vector<16x384xbf16>, vector<384x128xbf16>, vector<16x128xf32> -> vector<16x128xf32>
    %c0_12 = arith.constant 0 : index
    %c0_13 = arith.constant 0 : index
    %12 = vector.load %arg4[%c0_12, %c0_13] : memref<1x128xf32, #tpu.memory_space<vmem>>, vector<1x128xf32>
    %13 = vector.broadcast %12 : vector<1x128xf32> to vector<16x128xf32>
    %14 = arith.addf %11, %13 : vector<16x128xf32>
    %cst_14 = arith.constant 0.000000e+00 : f32
    %15 = vector.broadcast %cst_14 : f32 to vector<16x128xf32>
    %16 = arith.maximumf %14, %15 : vector<16x128xf32>
    %c1_15 = arith.constant 1 : index
    %c0_16 = arith.constant 0 : index
    %17 = vector.load %arg7[%c1_15, %c0_16] : memref<18x128xf32, #tpu.memory_space<vmem>>, vector<16x128xf32>
    tpu.vector_store %arg7[%c1_15, %c0_16], %16 {strides = array<i32>} : memref<18x128xf32, #tpu.memory_space<vmem>>, vector<16x128xf32>,
    %c0_17 = arith.constant 0 : index
    %c0_18 = arith.constant 0 : index
    %18 = vector.load %arg7[%c0_17, %c0_18] : memref<18x128xf32, #tpu.memory_space<vmem>>, vector<16x128xf32>
    %c2_19 = arith.constant 2 : index
    %c0_20 = arith.constant 0 : index
    %19 = vector.load %arg7[%c2_19, %c0_20] : memref<18x128xf32, #tpu.memory_space<vmem>>, vector<16x128xf32>
    %20 = tpu.concatenate %18, %16, %19 in 1 : vector<16x128xf32>, vector<16x128xf32>, vector<16x128xf32> -> vector<16x384xf32>
    %21 = arith.truncf %20 : vector<16x384xf32> to vector<16x384xbf16>
    %c0_21 = arith.constant 0 : index
    %c0_22 = arith.constant 0 : index
    %22 = vector.load %arg3[%c0_21, %c0_22] : memref<384x128xbf16, #tpu.memory_space<vmem>>, vector<384x128xbf16>
    %cst_23 = arith.constant dense<0.000000e+00> : vector<16x128xf32>
    %23 = tpu.matmul %21, %22, %cst_23 {dimension_numbers = #tpu.dot_dimension_numbers<[1], [0], [0], [1], [0, 0, 1, 1], [], []>} : vector<16x384xbf16>, vector<384x128xbf16>, vector<16x128xf32> -> vector<16x128xf32>
    %c0_24 = arith.constant 0 : index
    %c0_25 = arith.constant 0 : index
    %24 = vector.load %arg5[%c0_24, %c0_25] : memref<1x128xf32, #tpu.memory_space<vmem>>, vector<1x128xf32>
    %25 = vector.broadcast %24 : vector<1x128xf32> to vector<16x128xf32>
    %26 = arith.addf %23, %25 : vector<16x128xf32>
    %27 = arith.addf %26, %1 : vector<16x128xf32>
    %cst_26 = arith.constant 0.000000e+00 : f32
    %28 = vector.broadcast %cst_26 : f32 to vector<16x128xf32>
    %29 = arith.maximumf %27, %28 : vector<16x128xf32>
    %c0_27 = arith.constant 0 : index
    %c0_28 = arith.constant 0 : index
    %c0_29 = arith.constant 0 : index
    %30 = vector.load %arg6[%c0_27, %c0_28, %c0_29] : memref<1x16x128xf32, #tpu.memory_space<vmem>>, vector<1x16x128xf32>
    %31 = vector.shape_cast %30 : vector<1x16x128xf32> to vector<16x128xf32>
    %32 = vector.shape_cast %29 : vector<16x128xf32> to vector<1x16x128xf32>
    tpu.vector_store %arg6[%c0_27, %c0_28, %c0_29], %32 {strides = array<i32>} : memref<1x16x128xf32, #tpu.memory_space<vmem>>, vector<1x16x128xf32>,
    return
  }
  func.func @transform_0(%arg0: i32) -> (i32, i32, i32) {
    %c0_i32 = arith.constant 0 : i32
    %c0_i32_0 = arith.constant 0 : i32
    %c0_i32_1 = arith.constant 0 : i32
    return %arg0, %c0_i32, %c0_i32_0 : i32, i32, i32
  }
  func.func @transform_1(%arg0: i32) -> (i32, i32) {
    %c0_i32 = arith.constant 0 : i32
    %c0_i32_0 = arith.constant 0 : i32
    %c0_i32_1 = arith.constant 0 : i32
    return %c0_i32, %c0_i32_0 : i32, i32
  }
  func.func @transform_2(%arg0: i32) -> (i32, i32) {
    %c0_i32 = arith.constant 0 : i32
    %c0_i32_0 = arith.constant 0 : i32
    %c0_i32_1 = arith.constant 0 : i32
    return %c0_i32, %c0_i32_0 : i32, i32
  }
  func.func @transform_3(%arg0: i32) -> (i32, i32) {
    %c0_i32 = arith.constant 0 : i32
    %c0_i32_0 = arith.constant 0 : i32
    %c0_i32_1 = arith.constant 0 : i32
    return %c0_i32, %c0_i32_0 : i32, i32
  }
  func.func @transform_4(%arg0: i32) -> (i32, i32) {
    %c0_i32 = arith.constant 0 : i32
    %c0_i32_0 = arith.constant 0 : i32
    %c0_i32_1 = arith.constant 0 : i32
    return %c0_i32, %c0_i32_0 : i32, i32
  }
  func.func @transform_5(%arg0: i32) -> (i32, i32, i32) {
    %c0_i32 = arith.constant 0 : i32
    %c0_i32_0 = arith.constant 0 : i32
    %c0_i32_1 = arith.constant 0 : i32
    return %arg0, %c0_i32, %c0_i32_0 : i32, i32, i32
  }
}

</mosaic_0001>

<bundles_post_ra>
// kernel: tpu_custom_call.1
= control target key start
LH: loop header
LB: loop body
LE: loop exit
PB: predicated region body
PF: predicated region fallthrough
CT: control target
= control target key end

     0   :  { %10 = vsyncpa [#allocation4], 0  ;;  %s1692_s0 = inlined_call_operand.hbm [shape: f32[2,16,128], index: 0, kind: input, shape index: {}]   ;;  %s1693_s1 = inlined_call_operand.hbm [shape: bf16[384,128], index: 1, kind: input, shape index: {}]   ;;  %s1694_s2 = inlined_call_operand.hbm [shape: bf16[384,128], index: 2, kind: input, shape index: {}]   ;;  %s1695_s3 = inlined_call_operand.vmem [shape: f32[1,128], index: 3, kind: input, shape index: {}]   ;;  %s1696_s4 = inlined_call_operand.vmem [shape: f32[1,128], index: 4, kind: input, shape index: {}]   ;;  %s1697_s5 = inlined_call_operand.hbm [shape: f32[2,16,128], index: 5, kind: output, shape index: {}]  }
   0x1   :  { %12 = vsyncpa [#allocation4 + $0x1], 0 }
   0x2   :  { %13 = vsyncpa [#allocation7], 0 }
   0x3   :  { %14 = vsyncpa [#allocation5], 0 }
   0x4   :  { %16 = vsyncpa [#allocation5 + $0x1], 0  ;;  %s1458_s18 = smov 0   ;;  %s1460_s19 = smov 0  }
   0x5   :  { %s1462_s20 = smov 0   ;;  %s1464_s21 = smov 0  }
   0x6 LB: > { %s1479_s22 = sadd.s32 4294967295, %s1414_s21   ;;  %s971_s23 = sadd.s32 4294967294, %s1414_s21   ;;  %s1414_s21 = sphi %s1464_s21, %s1719_s21   ;;  %s1410_s20 = sphi %s1462_s20, %s1718_s20   ;;  %s1406_s19 = sphi %s1460_s19, %s1717_s19   ;;  %s1402_s18 = sphi %s1458_s18, %s1716_s18  }
   0x7   : > { %p42_p0 = scmp.ne.s32.totalorder %s1406_s19, %s1402_s18  ;;  %p1698_p1 = scmp.eq.s32.totalorder %s1479_s22, 0 }
   0x8   : > { %p156_p3 = scmp.eq.s32.totalorder %s971_s23, 1  ;;  %p972_p5 = scmp.ge.s32.totalorder %s1414_s21, 1 }
   0x9   : > { %p1488_p4 = por %p1698_p1, %p42_p0  ;;  %p163_p7 = scmp.lt.s32.totalorder %s1414_s21, 3 }
   0xa   : > { %p1493_p6 = por %p156_p3, %p42_p0  ;;  %s1416_s27 = smov [#allocation6]  }
   0xb   : > { %s1702_s24 = scalar_select %p1488_p4, 1, 0 }
   0xc   : > { %s1703_s25 = scalar_select %p1493_p6, 1, 0 }
   0xd   : > { %p1498_p8 = pnand %p972_p5, %p163_p7  ;;  %s175_s28 = sshll.u32 %s1416_s27, 4  ;;  %s176_s28 = int_to_ptr.vmem [resolvable:$true] %s175_s28 }
   0xe   : > { %s1417_s30 = smov [#allocation8]   ;;  %s1277_s7 = scalar_lea.vmem %s176_s28, 3072 }
   0xf   : > { %s1704_s26 = scalar_select %p1498_p8, 1, 0 }
  0x10   : > { %p1155_p9 = pneg %p1498_p8  ;;  %s188_s6 = sshll.u32 %s1417_s30, 4  ;;  %s189_s6 = int_to_ptr.vmem [resolvable:$true] %s188_s6 }
  0x11   : > { %p1278_p13 = scmp.ne.s32.totalorder %s176_s28, %s1277_s7  ;;  %p1285_p5 = scmp.lt.s32.totalorder %s176_s28, %s176_s28 }
  0x12   : > { %p1507_p11 = pnand %p1155_p9, %p1698_p1  ;;  %p1286_p7 = scmp.lt.s32.totalorder %s1277_s7, %s1277_s7 }
  0x14   : > { %p1268_p12 = pneg %p1507_p11  ;;  %p1287_p10 = por %p1286_p7, %p1285_p5 }
  0x16   : > { %p1280_p0 = pnand %p1278_p13, %p1268_p12 }
  0x18   : > { %p1281_p3 = pneg %p1280_p0 }
  0x1a   : > { %p1288_p9 = pnand %p1287_p10, %p1281_p3 }
  0x1c   : > { %1291 = shalt.err (!%p1288_p9)
}
  0x1d   : > { %s1418_s8 = smov 64   ;;  %s1419_s9 = smov 4  }
  0x1e   : > { %1158 = dma.hbm_to_vmem [thread:$0]  (!%p1507_p11), %s1693_s1, 3072, %s176_s28, [#allocation7], %s1418_s8, %s1418_s8, %s1419_s9  }
  0x1f   : > { %s1303_s12 = scalar_lea.vmem %s189_s6, 3072  ;;  %p1311_p2 = scmp.lt.s32.totalorder %s189_s6, %s189_s6 }
  0x20   : > { %p1304_p1 = scmp.ne.s32.totalorder %s189_s6, %s1303_s12  ;;  %p1312_p6 = scmp.lt.s32.totalorder %s1303_s12, %s1303_s12 }
  0x22   : > { %p1306_p13 = pnand %p1304_p1, %p1268_p12  ;;  %p1313_p5 = por %p1312_p6, %p1311_p2 }
  0x24   : > { %p1307_p0 = pneg %p1306_p13 }
  0x26   : > { %p1314_p10 = pnand %p1313_p5, %p1307_p0 }
  0x28   : > { %1317 = shalt.err (!%p1314_p10)
}
  0x29   : > { %1161 = dma.hbm_to_vmem [thread:$0]  (!%p1507_p11), %s1694_s2, 3072, %s189_s6, [#allocation7], %s1418_s8, %s1418_s8, %s1419_s9  }
  0x2a   : > { %s1530_s15 = sadd.s32 1, %s1414_s21   ;;  %s29_s16 = sadd.s32 1, %s1410_s20 }
  0x2b   : > { %s26_s17 = ssub.s32 %s1414_s21, %s1530_s15  ;;  %p36_p1 = scmp.ne.s32.totalorder %s1410_s20, %s1406_s19 }
  0x2c   : > { %p27_p2 = scmp.eq.s32.totalorder %s26_s17, 0  ;;  %p37_p6 = scmp.eq.s32.totalorder %s1414_s21, 0 }
  0x2d   : > { %p1706_p12 = scmp.eq.s32.totalorder %s1479_s22, 1  ;;  %p1172_p7 = scmp.lt.s32.totalorder %s1414_s21, 2 }
  0x2e   : > { %s1546_s27 = scalar_select %p27_p2, %s1410_s20, %s29_s16  }
  0x2f   : > { %p1540_p3 = por %p1706_p12, %p36_p1  ;;  %p38_p9 = por %p37_p6, %p36_p1 }
  0x30   : > { %s208_s28 = sand.u32 1, %s1410_s20   ;;  %s1039_s30 = sshll.u32 %s1414_s21, 8 }
  0x31   : > { %s1707_s23 = scalar_select %p1540_p3, 1, 0 }
  0x32   : > { %s976_s29 = sshll.u32 %s208_s28, 4  ;;  %s1553_s8 = scalar_lea.hbm %s1692_s0, %s1039_s30 }
  0x33   : > { %s212_s9 = scalar_lea.vmem [#allocation3], %s976_s29  ;;  %p1557_p11 = pnand %p1172_p7, %p38_p9 }
  0x34   : > { %s219_s10 = sshll.u32 %s212_s9, 4  ;;  %s1561_s12 = scalar_lea.sflag [#allocation4], %s208_s28  ;;  %s1555_s10 = int_to_ptr.vmem [resolvable:$true] %s219_s10 }
  0x35   : > { %s1318_s13 = scalar_lea.hbm %s1553_s8, 256  ;;  %p1320_p0 = pneg %p1557_p11 }
  0x36   : > { %p1319_p13 = scmp.ne.s32.totalorder %s1553_s8, %s1318_s13  ;;  %s1323_s17 = scalar_lea.hbm %s1692_s0, 512 }
  0x37   : > { %p1324_p1 = scmp.lt.s32.totalorder %s1553_s8, %s1692_s0  ;;  %p1325_p2 = scmp.lt.s32.totalorder %s1323_s17, %s1318_s13 }
  0x38   : > { %p1321_p5 = pnand %p1320_p0, %p1319_p13 }
  0x39   : > { %p1326_p6 = por %p1325_p2, %p1324_p1 }
  0x3a   : > { %p1322_p10 = pneg %p1321_p5 }
  0x3c   : > { %p1327_p12 = pnand %p1326_p6, %p1322_p10 }
  0x3e   : > { %1330 = shalt.err (!%p1327_p12)
}
  0x3f   : > { %s1331_s28 = scalar_lea.vmem %s1555_s10, 256  ;;  %s1420_s6 = smov [#allocation3]  }
  0x40   : > { %p1332_p7 = scmp.ne.s32.totalorder %s1555_s10, %s1331_s28  ;;  %s1336_s7 = sshll.u32 %s1420_s6, 4  ;;  %s1337_s7 = int_to_ptr.vmem [resolvable:$false] %s1336_s7 }
  0x41   : > { %s1338_s9 = scalar_lea.vmem %s1337_s7, 512  ;;  %p1339_p5 = scmp.lt.s32.totalorder %s1555_s10, %s1337_s7 }
  0x42   : > { %p1334_p9 = pnand %p1332_p7, %p1320_p0  ;;  %p1340_p3 = scmp.lt.s32.totalorder %s1338_s9, %s1331_s28 }
  0x44   : > { %p1335_p13 = pneg %p1334_p9  ;;  %p1341_p4 = por %p1340_p3, %p1339_p5 }
  0x46   : > { %p1342_p8 = pnand %p1341_p4, %p1335_p13 }
  0x48   : > { %1345 = shalt.err (!%p1342_p8)
}
  0x49   : > { %s1421_s13 = smov 128   ;;  %s1422_s14 = smov 8  }
  0x4a   : > { %1165 = dma.hbm_to_vmem [thread:$0]  (!%p1557_p11), %s1553_s8, 256, %s1555_s10, %s1561_s12, %s1421_s13, %s1421_s13, %s1422_s14  }
  0x4b   : > { %p1709_p0 = scmp.ne.s32.totalorder %s1704_s26, 0 }
  0x4c   : > { %s1585_s16 = sand.u32 (!%p1709_p0), 1, %s1406_s19   ;;  %p1710_p4 = scmp.ne.s32.totalorder (!%p1709_p0), %s1702_s24, 0 }
  0x4d   : > { %231 = sbr.rel (%p1709_p0) target bundleno = 560 (0x230), region = 40  ;;  %s980_s17 = sshll.u32 (!%p1709_p0), %s1585_s16, 4 }
  0x4e   : > { %s234_s29 = scalar_lea.sflag (!%p1709_p0), [#allocation4], %s1585_s16  ;;  %s1591_s30 = scalar_lea.vmem (!%p1709_p0), [#allocation3], %s980_s17 }
  0x52   : > { %1389 = dma.done.wait (%p1710_p4), %s234_s29, 256  }
  0x53   : > { %1391 = vsyncadd (%p1710_p4), %s234_s29, 4294967040  ;;  %p1711_p8 = scmp.eq.s32.totalorder %s1479_s22, 0 }
  0x55   : > { %1393 = dma.done.wait (%p1711_p8), [#allocation7], 6144   ;;  %p1712_p3 = pmov %p1711_p8 }
  0x56   : > { %v1423_v0 = vmov 0.0   ;;  %vm1424_vm0 = vmmov 0   ;;  %v1218_v1 = vld [vmem:[#allocation6 + $0x78] sm:$0xff]   ;;  %v1221_v4 = vld [vmem:[#allocation6 + $0x70] sm:$0xff]   ;;  %v1224_v7 = vld [vmem:[#allocation6 + $0x68] sm:$0xff]   ;;  %s1040_s11 = sshll.u32 %s1479_s22, 8 }
  0x57   : > { %1395 = vsyncadd (%p1712_p3), [#allocation7], 4294961152  ;;  %1103 = vmatprep.subr.bf16.mxu1 %v1423_v0  ;;  %275 = vst [vmem:[#allocation2] sm:$0x1] %v1423_v0  ;;  %1119 = vmatprep.mubr.msk.bf16.mxu1 %vm1424_vm0, %v1423_v0  ;;  %v1219_v2 = vld [vmem:[#allocation6 + $0x38] sm:$0xff]   ;;  %v1222_v5 = vld [vmem:[#allocation6 + $0x30] sm:$0xff]   ;;  %s1647_s9 = scalar_lea.hbm %s1697_s5, %s1040_s11 }
  0x58   : > { %276 = vst [vmem:[#allocation2 + $0x11] sm:$0x1] %v1423_v0  ;;  %1041 = vmatprep.subr.bf16.mxu0 %v1218_v1  ;;  %v1220_v3 = vld [vmem:[#allocation6 + $0xb8] sm:$0xff]   ;;  %v1223_v6 = vld [vmem:[#allocation6 + $0xb0] sm:$0xff]   ;;  %v1225_v8 = vld [vmem:[#allocation6 + $0x28] sm:$0xff]   ;;  %s271_s12 = scalar_lea.vmem [#allocation9], %s980_s17 }
  0x59   : > { %1042 = vmatpush3.bf16.msra.mxu0 %v1219_v2  ;;  %1104 = vmatpush3.bf16.msra.mxu1 %v1220_v3  ;;  %v1226_v9 = vld [vmem:[#allocation6 + $0xa8] sm:$0xff]   ;;  %v1227_v10 = vld [vmem:[#allocation6 + $0x60] sm:$0xff]   ;;  %v1230_v13 = vld [vmem:[#allocation6 + $0x58] sm:$0xff]   ;;  %s879_s28 = sshll.u32 %s271_s12, 4  ;;  %s866_s13 = scalar_lea.sflag [#allocation5], %s1585_s16  ;;  %s1649_s28 = int_to_ptr.vmem [resolvable:$true] %s879_s28 }
  0x5a   : > { %1043 = vmatprep.subr.bf16.mxu0 %v1221_v4  ;;  %1105 = vmatprep.subr.bf16.mxu1 %v1423_v0  ;;  %v1228_v11 = vld [vmem:[#allocation6 + $0x20] sm:$0xff]   ;;  %v1231_v14 = vld [vmem:[#allocation6 + $0x18] sm:$0xff]   ;;  %v1233_v16 = vld [vmem:[#allocation6 + $0x50] sm:$0xff]   ;;  %s1346_s22 = scalar_lea.vmem %s1649_s28, 256  ;;  %p1713_p10 = scmp.ne.s32.totalorder %s1707_s23, 0 }
  0x5b   : > { %v1229_v12 = vld [vmem:[#allocation6 + $0xa0] sm:$0xff]   ;;  %v1232_v15 = vld [vmem:[#allocation6 + $0x98] sm:$0xff]   ;;  %v1234_v17 = vld [vmem:[#allocation6 + $0x10] sm:$0xff]   ;;  %p1347_p11 = scmp.ne.s32.totalorder %s1649_s28, %s1346_s22  ;;  %s1425_s14 = smov [#allocation9]  }
  0x5c   : > { %v1235_v18 = vld [vmem:[#allocation6 + $0x90] sm:$0xff]   ;;  %v1236_v19 = vld [vmem:[#allocation6 + $0x48] sm:$0xff]   ;;  %v1239_v22 = vld [vmem:[#allocation6 + $0x40] sm:$0xff]   ;;  %s1350_s17 = sshll.u32 %s1425_s14, 4  ;;  %s1351_s17 = int_to_ptr.vmem [resolvable:$false] %s1350_s17 }
  0x5d   : > { %1044 = vmatpush3.bf16.msra.mxu0 %v1222_v5  ;;  %1106 = vmatpush3.bf16.msra.mxu1 %v1223_v6  ;;  %v1237_v20 = vld [vmem:[#allocation6 + $0x8] sm:$0xff]   ;;  %v1612_v23 = vld [vmem:[%s1591_s30] sm:$0xff]  ;;  %v1242_v28 = vld [vmem:[#allocation8 + $0x78] sm:$0xff]   ;;  %p1348_p1 = pnand %p1347_p11, %p1713_p10  ;;  %s1352_s29 = scalar_lea.vmem %s1351_s17, 512 }
  0x5e   : > { %1045 = vmatprep.subr.bf16.mxu0 %v1224_v7  ;;  %1107 = vmatprep.subr.bf16.mxu1 %v1423_v0  ;;  %v1238_v21 = vld [vmem:[#allocation6 + $0x88] sm:$0xff]   ;;  %277 = vst [vmem:[#allocation2 + $0x1] sm:$0xff] %v1612_v23  ;;  %v1240_v26 = vld [vmem:[#allocation6] sm:$0xff]   ;;  %v1243_v29 = vld [vmem:[#allocation8 + $0x38] sm:$0xff]   ;;  %p1353_p6 = scmp.lt.s32.totalorder %s1649_s28, %s1351_s17  ;;  %p1354_p12 = scmp.lt.s32.totalorder %s1352_s29, %s1346_s22 }
  0x5f   : > { %v1615_v24 = vld [vmem:[%s1591_s30 + $0x8] sm:$0xff]  ;;  %v1241_v27 = vld [vmem:[#allocation6 + $0x80] sm:$0xff]   ;;  %v1245_v31 = vld [vmem:[#allocation8 + $0x70] sm:$0xff]   ;;  %p1349_p2 = pneg %p1348_p1 }
  0x60   : > { %278 = vst [vmem:[#allocation2 + $0x9] sm:$0xff] %v1615_v24  ;;  %v284_v25 = vpack.c.bf16 %v1615_v24, %v1612_v23  ;;  %v1244_v30 = vld [vmem:[#allocation8 + $0xb8] sm:$0xff]   ;;  %v1246_v38 = vld [vmem:[#allocation8 + $0x30] sm:$0xff]   ;;  %v1248_v40 = vld [vmem:[#allocation8 + $0x68] sm:$0xff]   ;;  %p1355_p7 = por %p1354_p12, %p1353_p6 }
  0x61   : > { %1046 = vmatpush3.bf16.msra.mxu0 %v1225_v8  ;;  %1108 = vmatpush3.bf16.msra.mxu1 %v1226_v9  ;;  %v1247_v39 = vld [vmem:[#allocation8 + $0xb0] sm:$0xff]   ;;  %v1249_v41 = vld [vmem:[#allocation8 + $0x28] sm:$0xff]   ;;  %v1251_v43 = vld [vmem:[#allocation8 + $0x60] sm:$0xff]  }
  0x62   : > { %1047 = vmatprep.subr.bf16.mxu0 %v1227_v10  ;;  %1109 = vmatprep.subr.bf16.mxu1 %v1423_v0  ;;  %v1250_v42 = vld [vmem:[#allocation8 + $0xa8] sm:$0xff]   ;;  %v1252_v44 = vld [vmem:[#allocation8 + $0x20] sm:$0xff]   ;;  %v1254_v46 = vld [vmem:[#allocation8 + $0x58] sm:$0xff]   ;;  %p1356_p9 = pnand %p1355_p7, %p1349_p2 }
  0x63   : > { %517 = vmatprep.mubr.bf16.mxu0 %v284_v25  ;;  %v1253_v45 = vld [vmem:[#allocation8 + $0xa0] sm:$0xff]   ;;  %v1255_v47 = vld [vmem:[#allocation8 + $0x18] sm:$0xff]   ;;  %v1257_v49 = vld [vmem:[#allocation8 + $0x50] sm:$0xff]  }
  0x64   : > { %v1256_v48 = vld [vmem:[#allocation8 + $0x98] sm:$0xff]   ;;  %v1258_v50 = vld [vmem:[#allocation8 + $0x10] sm:$0xff]   ;;  %v1260_v52 = vld [vmem:[#allocation8 + $0x48] sm:$0xff]  }
  0x65   : > { %1048 = vmatpush3.bf16.msra.mxu0 %v1228_v11  ;;  %1110 = vmatpush3.bf16.msra.mxu1 %v1229_v12  ;;  %v279_v32 = vld [vmem:[#allocation2] sm:$0xff]  ;;  %v1259_v51 = vld [vmem:[#allocation8 + $0x90] sm:$0xff]   ;;  %v1263_v55 = vld [vmem:[#allocation8 + $0x40] sm:$0xff]  }
  0x66   : > { %1049 = vmatprep.subr.bf16.mxu0 %v1230_v13  ;;  %1111 = vmatprep.subr.bf16.mxu1 %v1423_v0  ;;  %v1261_v53 = vld [vmem:[#allocation8 + $0x8] sm:$0xff]   ;;  %v1264_v56 = vld [vmem:[#allocation8] sm:$0xff]  }
  0x67   : > { %v280_v33 = vld [vmem:[#allocation2 + $0x8] sm:$0xff]  ;;  %v1262_v54 = vld [vmem:[#allocation8 + $0x88] sm:$0xff]   ;;  %v1265_v57 = vld [vmem:[#allocation8 + $0x80] sm:$0xff]  }
  0x68   : > { %v281_v34 = vld [vmem:[#allocation2 + $0x2] sm:$0xff]  ;;  %v283_v35 = vpack.c.bf16 %v280_v33, %v279_v32  ;;  %v282_v36 = vld [vmem:[#allocation2 + $0xa] sm:$0xff]  ;;  %v984_v60 = vld [vmem:[%s1695_s3] ss:$0 sm:$0xff] }
  0x69   : > { %1050 = vmatpush3.bf16.msra.mxu0 %v1231_v14  ;;  %1112 = vmatpush3.bf16.msra.mxu1 %v1232_v15  ;;  %v285_v37 = vpack.c.bf16 %v282_v36, %v281_v34 }
  0x6a   : > { %1051 = vmatprep.subr.bf16.mxu0 %v1233_v16  ;;  %1113 = vmatprep.subr.bf16.mxu1 %v1423_v0 }
  0x6d   : > { %1052 = vmatpush3.bf16.msra.mxu0 %v1234_v17  ;;  %1114 = vmatpush3.bf16.msra.mxu1 %v1235_v18 }
  0x6e   : > { %1053 = vmatprep.subr.bf16.mxu0 %v1236_v19  ;;  %1115 = vmatprep.subr.bf16.mxu1 %v1423_v0 }
  0x71   : > { %1054 = vmatpush3.bf16.msra.mxu0 %v1237_v20  ;;  %1116 = vmatpush3.bf16.msra.mxu1 %v1238_v21  ;;  %v1009_v20 = vld [vmem:[%s1696_s4] ss:$0 sm:$0xff] }
  0x72   : > { %1055 = vmatprep.subr.bf16.mxu0 %v1239_v22  ;;  %1117 = vmatprep.subr.bf16.mxu1 %v1423_v0 }
  0x75   : > { %1056 = vmatpush3.bf16.msra.mxu0 %v1240_v26  ;;  %1118 = vmatpush3.bf16.msra.mxu1 %v1241_v27 }
  0x76   : > { %1072 = vmatprep.subr.bf16.mxu0 %v1242_v28  ;;  %1123 = vmatprep.subr.bf16.mxu1 %v1423_v0 }
  0x78   : > { %518 = vmatmul.mubr.bf16.vlgmr.msra.gmra.mxu0 %v283_v35  ;;  %1120 = vmatmul.mubr.bf16.vlgmr.msra.gmra.mxu1 %v285_v37 }
  0x79   : > { %1073 = vmatpush3.bf16.msra.mxu0 %v1243_v29  ;;  %1124 = vmatpush3.bf16.msra.mxu1 %v1244_v30 }
  0x7a   : > { %1074 = vmatprep.subr.bf16.mxu0 %v1245_v31  ;;  %1125 = vmatprep.subr.bf16.mxu1 %v1423_v0 }
  0x7b   : > { %1139 = vmatprep.mubr.msk.bf16.mxu1 %vm1424_vm0, %v1423_v0 }
  0x7d   : > { %1075 = vmatpush3.bf16.msra.mxu0 %v1246_v38  ;;  %1126 = vmatpush3.bf16.msra.mxu1 %v1247_v39 }
  0x7e   : > { %1127 = vmatprep.subr.bf16.mxu1 %v1423_v0  ;;  %1076 = vmatprep.subr.bf16.mxu0 %v1248_v40 }
  0x81   : > { %1077 = vmatpush3.bf16.msra.mxu0 %v1249_v41  ;;  %1128 = vmatpush3.bf16.msra.mxu1 %v1250_v42 }
  0x82   : > { %1129 = vmatprep.subr.bf16.mxu1 %v1423_v0  ;;  %1078 = vmatprep.subr.bf16.mxu0 %v1251_v43 }
  0x85   : > { %1079 = vmatpush3.bf16.msra.mxu0 %v1252_v44  ;;  %1130 = vmatpush3.bf16.msra.mxu1 %v1253_v45 }
  0x86   : > { %1131 = vmatprep.subr.bf16.mxu1 %v1423_v0  ;;  %1080 = vmatprep.subr.bf16.mxu0 %v1254_v46 }
  0x89   : > { %1081 = vmatpush3.bf16.msra.mxu0 %v1255_v47  ;;  %1132 = vmatpush3.bf16.msra.mxu1 %v1256_v48 }
  0x8a   : > { %1133 = vmatprep.subr.bf16.mxu1 %v1423_v0  ;;  %1082 = vmatprep.subr.bf16.mxu0 %v1257_v49 }
  0x8d   : > { %1083 = vmatpush3.bf16.msra.mxu0 %v1258_v50  ;;  %1134 = vmatpush3.bf16.msra.mxu1 %v1259_v51 }
  0x8e   : > { %1135 = vmatprep.subr.bf16.mxu1 %v1423_v0  ;;  %1084 = vmatprep.subr.bf16.mxu0 %v1260_v52 }
  0x91   : > { %1085 = vmatpush3.bf16.msra.mxu0 %v1261_v53  ;;  %1136 = vmatpush3.bf16.msra.mxu1 %v1262_v54 }
  0x92   : > { %1086 = vmatprep.subr.bf16.mxu0 %v1263_v55  ;;  %1137 = vmatprep.subr.bf16.mxu1 %v1423_v0 }
  0x95   : > { %1087 = vmatpush3.bf16.msra.mxu0 %v1264_v56  ;;  %1138 = vmatpush3.bf16.msra.mxu1 %v1265_v57 }
 0x138   : > { %v1057_v58 = vpop.f32.mrf.mxu0  ;;  %v560_v59 = vpop.f32.mrf.mxu1 }
 0x13a   : > { %v1058_v61 = vpop.f32.mrf.mxu0  ;;  %v1121_v63 = vpop.f32.mrf.mxu1 }
 0x13b   : > { %v1059_v62 = vadd.f32 %v1058_v61, %v1057_v58 }
 0x13c   : > { %v1060_v1 = vpop.f32.mrf.mxu0  ;;  %v563_v3 = vpop.f32.mrf.mxu1 }
 0x13d   : > { %v520_v2 = vadd.f32 %v1059_v62, %v984_v60 }
 0x13e   : > { %v1061_v4 = vpop.f32.mrf.mxu0  ;;  %v1122_v7 = vpop.f32.mrf.mxu1 }
 0x13f   : > { %v561_v5 = vadd.f32 %v560_v59, %v520_v2  ;;  %v1062_v6 = vadd.f32 %v1061_v4, %v1060_v1 }
 0x141   : > { %v567_v8 = vmax.f32 %v561_v5, 0.0  ;;  %v523_v0 = vadd.f32 %v1062_v6, %v984_v60 }
 0x143   : > { %569 = vst [vmem:[#allocation2 + $0x1] sm:$0xff] %v567_v8  ;;  %v564_v9 = vadd.f32 %v563_v3, %v523_v0 }
 0x145   : > { %v568_v10 = vmax.f32 %v564_v9, 0.0 }
 0x147   : > { %570 = vst [vmem:[#allocation2 + $0x9] sm:$0xff] %v568_v10  ;;  %v576_v11 = vpack.c.bf16 %v568_v10, %v567_v8 }
 0x149   : > { %809 = vmatprep.mubr.bf16.mxu0 %v576_v11 }
 0x14a   : > { %v571_v12 = vld [vmem:[#allocation2] sm:$0xff] }
 0x14e   : > { %v572_v13 = vld [vmem:[#allocation2 + $0x8] sm:$0xff] }
 0x14f   : > { %v573_v14 = vld [vmem:[#allocation2 + $0x2] sm:$0xff]  ;;  %v574_v15 = vld [vmem:[#allocation2 + $0xa] sm:$0xff]  ;;  %v575_v16 = vpack.c.bf16 %v572_v13, %v571_v12 }
 0x150   : > { %v577_v17 = vpack.c.bf16 %v574_v15, %v573_v14 }
 0x151   : > { %810 = vmatmul.mubr.bf16.vlgmr.msra.gmra.mxu0 %v575_v16 }
 0x152   : > { %1140 = vmatmul.mubr.bf16.vlgmr.msra.gmra.mxu1 %v577_v17 }
 0x211   : > { %v1088_v18 = vpop.f32.mrf.mxu0 }
 0x212   : > { %v852_v19 = vpop.f32.mrf.mxu1 }
 0x213   : > { %v1089_v21 = vpop.f32.mrf.mxu0 }
 0x214   : > { %v1141_v22 = vpop.f32.mrf.mxu1  ;;  %v1090_v25 = vadd.f32 %v1089_v21, %v1088_v18 }
 0x215   : > { %v1091_v26 = vpop.f32.mrf.mxu0 }
 0x216   : > { %v855_v27 = vpop.f32.mrf.mxu1  ;;  %v812_v28 = vadd.f32 %v1090_v25, %v1009_v20 }
 0x217   : > { %v1092_v29 = vpop.f32.mrf.mxu0 }
 0x218   : > { %v1142_v30 = vpop.f32.mrf.mxu1  ;;  %v853_v31 = vadd.f32 %v852_v19, %v812_v28  ;;  %v1093_v32 = vadd.f32 %v1092_v29, %v1091_v26 }
 0x21a   : > { %v859_v33 = vadd.f32 %v853_v31, %v1612_v23  ;;  %v815_v34 = vadd.f32 %v1093_v32, %v1009_v20 }
 0x21c   : > { %v861_v35 = vmax.f32 %v859_v33, 0.0  ;;  %v856_v36 = vadd.f32 %v855_v27, %v815_v34 }
 0x21e   : > { %863 = vst [vmem:[%s271_s12] sm:$0xff] %v861_v35  ;;  %v860_v37 = vadd.f32 %v856_v36, %v1615_v24 }
 0x220   : > { %v862_v23 = vmax.f32 %v860_v37, 0.0 }
 0x222   : > { %864 = vst [vmem:[%s271_s12 + $0x8] sm:$0xff] %v862_v23 }
 0x223   : > { %1359 = shalt.err (!%p1356_p9)
}
 0x224   : > { %s1360_s30 = scalar_lea.hbm %s1647_s9, 256  ;;  %s1364_s8 = scalar_lea.hbm %s1697_s5, 512 }
 0x225   : > { %p1361_p13 = scmp.ne.s32.totalorder %s1647_s9, %s1360_s30  ;;  %p1365_p4 = scmp.lt.s32.totalorder %s1647_s9, %s1697_s5 }
 0x226   : > { %p1366_p8 = scmp.lt.s32.totalorder %s1364_s8, %s1360_s30 }
 0x227   : > { %p1362_p5 = pnand %p1361_p13, %p1713_p10 }
 0x228   : > { %p1367_p3 = por %p1366_p8, %p1365_p4 }
 0x229   : > { %p1363_p0 = pneg %p1362_p5 }
 0x22b   : > { %p1368_p11 = pnand %p1367_p3, %p1363_p0 }
 0x22d   : > { %1371 = shalt.err (!%p1368_p11)
}
 0x22e   : > { %s1426_s12 = smov 128   ;;  %s1427_s6 = smov 8  }
 0x22f   : > { %1153 = dma.vmem_to_hbm [thread:$0]  (%p1713_p10), %s1649_s28, 256, %s1647_s9, %s866_s13, %s1426_s12, %s1426_s12, %s1427_s6  }
 0x230 PF: > { %s894_s7 = sand.u32 1, %s1402_s18   ;;  %p1714_p1 = scmp.ne.s32.totalorder %s1703_s25, 0 }
 0x231   : > { %p1715_p2 = scmp.ge.s32.totalorder %s1414_s21, 2  ;;  %s895_s22 = scalar_lea.sflag [#allocation5], %s894_s7 }
 0x233   : > { %p1167_p6 = pnand %p1715_p2, %p1714_p1 }
 0x235   : > { %p1168_p12 = pneg %p1167_p6 }
 0x237   : > { %1397 = dma.done.wait (%p1168_p12), %s895_s22, 256  }
 0x238   : > { %1399 = vsyncadd (%p1168_p12), %s895_s22, 4294967040  ;;  %p19_p7 = scmp.ge.s32.totalorder %s1530_s15, 4   ;;  %s1716_s18 = smov %s1406_s19 }
 0x239   : > { %s1717_s19 = smov %s1410_s20  ;;  %s1718_s20 = smov %s1546_s27 }
 0x23a   : > { %s1719_s21 = smov %s1530_s15  ;;  %21 = sbr.rel (!%p19_p7) target bundleno = 6 (0x6), region = 93 }
 0x23f   :  { %900 = vsyncpa [#allocation4], 1 }
 0x240   :  { %902 = vsyncpa [#allocation4 + $0x1], 1 }
 0x241   :  { %903 = vsyncpa [#allocation7], 1 }
 0x242   :  { %904 = vsyncpa [#allocation5], 1 }
 0x243   :  { %906 = vsyncpa [#allocation5 + $0x1], 1 }

</bundles_post_ra>
